<compile_context>
chip_gen: v6e
topology: v6e:2x2x1
jax: 0.10.0
libtpu: 0.0.40
codegen_flags: <defaults>
</compile_context>

<pallas_src>
import math
from functools import partial

import numpy as np
import jax
import jax.numpy as jnp
from jax.experimental import pallas as pl
from jax.experimental.pallas import tpu as pltpu


# ----------------------------------------------------------------------------- constants
BN_EPS = 1e-5          # e3nn BatchNorm default
LANE = 128             # TPU lane width: pad all feature dims to a multiple of this
MAX_ROW_TILE = 256     # node-tile height (sublane axis); fewer, fatter grid steps
VMEM_LIMIT = 32 * 1024 * 1024  # raise v5e's 16 MiB scoped default; no-op on v6e/v7x

# e3nn wraps scalar activations with normalize2mom; for SiLU the constant is
# 1/sqrt(E_{x~N(0,1)}[silu(x)^2]).  e3nn estimates it by Monte-Carlo; here we use quadrature.
# TODO(synk): not bit-matched to e3nn's Monte-Carlo estimate (agrees to ~1e-3).
_xg = np.linspace(-12.0, 12.0, 480001, dtype=np.float64)
_pdf = np.exp(-0.5 * _xg * _xg) / np.sqrt(2.0 * np.pi)
_silu = _xg / (1.0 + np.exp(-_xg))
SILU_NORM = float(1.0 / np.sqrt(np.sum(_silu * _silu * _pdf) * (_xg[1] - _xg[0])))


# ----------------------------------------------------------------------------- small helpers
def round_up(x, m):
    return ((x + m - 1) // m) * m


def pad2(a, rows, cols):
    out = np.zeros((rows, cols), np.float32)
    out[: a.shape[0], : a.shape[1]] = a
    return out


def pick_row_tile(n):
    """Largest node tile <= MAX_ROW_TILE (multiple of 8 sublanes); whole batch if it fits."""
    return min(round_up(n, 8), MAX_ROW_TILE)


# ----------------------------------------------------------------------------- irreps helpers
def parse_irreps(s):
    """'8x0e+8x1o' -> [(mul, l, parity)] with parity in {+1,-1}."""
    out = []
    for tok in s.replace(" ", "").split("+"):
        mul, rest = tok.split("x")
        l = int(rest[:-1])
        p = 1 if rest[-1] == "e" else -1
        out.append((int(mul), l, p))
    return out


def irreps_dim(irreps):
    return sum(mul * (2 * l + 1) for mul, l, _ in irreps)


def scalar_mask(irreps):
    """(1, D) float mask: 1.0 on columns belonging to 0e scalar irreps."""
    D = irreps_dim(irreps)
    m = np.zeros((1, D), np.float32)
    off = 0
    for mul, l, p in irreps:
        d = mul * (2 * l + 1)
        if l == 0 and p == 1:
            m[0, off:off + d] = 1.0
        off += d
    return m


def bn_meta(irreps):
    """Metadata for e3nn-style irreps BatchNorm.

    Returns mask_out (1,D), poolm (D,nvc) component-mean pooling for non-scalar channels,
    expand (nvc,D) 0/1 channel->column expansion, gamma (1,D), beta (1,D) (e3nn affine init).
    """
    D = irreps_dim(irreps)
    mask = scalar_mask(irreps)
    vec_channels = []
    off = 0
    for mul, l, p in irreps:
        d = 2 * l + 1
        for c in range(mul):
            if not (l == 0 and p == 1):
                vec_channels.append(list(range(off + c * d, off + (c + 1) * d)))
        off += mul * d
    nvc = max(len(vec_channels), 1)  # keep >=1 so shapes are valid (dummy column if none)
    poolm = np.zeros((D, nvc), np.float32)
    expand = np.zeros((nvc, D), np.float32)
    for ci, cols in enumerate(vec_channels):
        for col in cols:
            poolm[col, ci] = 1.0 / len(cols)
            expand[ci, col] = 1.0
    gamma = np.ones((1, D), np.float32)   # e3nn BatchNorm affine init: weight = 1
    beta = np.zeros((1, D), np.float32)   # bias = 0 (scalar irreps only; zero elsewhere)
    return mask, poolm, expand, gamma, beta


def o3_linear_flat(key, irreps_in, irreps_out):
    """Flatten an e3nn o3.Linear (internal weights ~ N(0,1), /sqrt(fan_in)) to a (D_in, D_out)
    block-diagonal-per-l matrix.  Output irreps with no matching input path stay zero."""
    D_in, D_out = irreps_dim(irreps_in), irreps_dim(irreps_out)
    W = np.zeros((D_in, D_out), np.float32)
    off_o = 0
    for mul_o, l_o, p_o in irreps_out:
        dim_o = mul_o * (2 * l_o + 1)
        off_i = 0
        for mul_i, l_i, p_i in irreps_in:
            dim_i = mul_i * (2 * l_i + 1)
            if (l_i, p_i) == (l_o, p_o) and mul_i > 0 and mul_o > 0:
                key, sub = jax.random.split(key)
                w = np.asarray(jax.random.normal(sub, (mul_i, mul_o), jnp.float32))
                w = w / np.sqrt(mul_i)
                W[off_i:off_i + dim_i, off_o:off_o + dim_o] = np.kron(
                    w, np.eye(2 * l_i + 1, dtype=np.float32))
            off_i += dim_i
        off_o += dim_o
    return W, key


# ----------------------------------------------------------------------------- Pallas kernels
def _matmul_kernel(x_ref, w_ref, o_ref):
    # bf16 operands, f32 MXU accumulation.
    o_ref[...] = jnp.dot(x_ref[...], w_ref[...], preferred_element_type=jnp.float32)


def _adapter_pass1_kernel(x_ref, wd_ref, wu_ref, md_ref, y_ref, sy_ref, sy2_ref, *, silu_cst):
    """Per node tile: y = linear_up(activation(linear_down(x))); emit y and partial batch sums."""
    h = jnp.dot(x_ref[...], wd_ref[...], preferred_element_type=jnp.float32)      # bf16 x bf16
    # e3nn Activation: normalized SiLU on 0e scalar columns, identity on l>0 columns.
    h = jnp.where(md_ref[...] > 0.0, silu_cst * h * jax.nn.sigmoid(h), h)
    y = jnp.dot(h.astype(jnp.bfloat16), wu_ref[...], preferred_element_type=jnp.float32)
    y_ref[...] = y
    sy = jnp.sum(y, axis=0, keepdims=True)          # (1, Dop)  partial sum(y)   over this tile
    sy2 = jnp.sum(y * y, axis=0, keepdims=True)     # (1, Dop)  partial sum(y^2) over this tile
    # Broadcast to an (8, Dop) sublane-aligned block (lane-dense, unmasked stores).
    sy_ref[...] = jnp.broadcast_to(sy, sy_ref.shape)
    sy2_ref[...] = jnp.broadcast_to(sy2, sy2_ref.shape)


def _adapter_pass2_kernel(y_ref, scale_ref, shift_ref, o_ref):
    # Fused e3nn BatchNorm + affine as a single per-column multiply-add.
    o_ref[...] = y_ref[...] * scale_ref[...] + shift_ref[...]


# ----------------------------------------------------------------------------- wrappers
def pallas_linear(x, w_pad, d_out):
    """Node-tiled matmul on padded, bf16 operands (used for node_embedding)."""
    N, d_in = x.shape
    Dip, Dop = w_pad.shape
    row_tile = pick_row_tile(N)
    n_pad = round_up(N, row_tile)
    xp = jnp.pad(x, ((0, n_pad - N), (0, Dip - d_in))).astype(jnp.bfloat16)
    wb = w_pad.astype(jnp.bfloat16)
    out = pl.pallas_call(
        _matmul_kernel,
        out_shape=jax.ShapeDtypeStruct((n_pad, Dop), jnp.float32),
        grid=(n_pad // row_tile,),
        in_specs=[pl.BlockSpec((row_tile, Dip), lambda i: (i, 0)),
                  pl.BlockSpec((Dip, Dop), lambda i: (0, 0))],
        out_specs=pl.BlockSpec((row_tile, Dop), lambda i: (i, 0)),
        compiler_params=pltpu.CompilerParams(
            dimension_semantics=("parallel",), vmem_limit_bytes=VMEM_LIMIT),
    )(xp, wb)
    return out[:N, :d_out]


def adapter_apply(params, x):
    """Two-pass fused Adapter forward (node-tiled, batch-exact BatchNorm statistics)."""
    N, d_in = x.shape
    Dip, Ddp = params["Wd"].shape
    Dop = params["Wu"].shape[1]
    row_tile = pick_row_tile(N)
    n_pad = round_up(N, row_tile)
    num_tiles = n_pad // row_tile

    # Padded rows/columns are zero; they contribute nothing to the batch sums below.
    xp = jnp.pad(x, ((0, n_pad - N), (0, Dip - d_in))).astype(jnp.bfloat16)
    wd_b = params["Wd"].astype(jnp.bfloat16)
    wu_b = params["Wu"].astype(jnp.bfloat16)

    kernel1 = partial(_adapter_pass1_kernel, silu_cst=SILU_NORM)
    y, p_sy, p_sy2 = pl.pallas_call(
        kernel1,
        out_shape=(jax.ShapeDtypeStruct((n_pad, Dop), jnp.float32),
                   jax.ShapeDtypeStruct((num_tiles * 8, Dop), jnp.float32),
                   jax.ShapeDtypeStruct((num_tiles * 8, Dop), jnp.float32)),
        grid=(num_tiles,),
        in_specs=[pl.BlockSpec((row_tile, Dip), lambda i: (i, 0)),
                  pl.BlockSpec((Dip, Ddp), lambda i: (0, 0)),
                  pl.BlockSpec((Ddp, Dop), lambda i: (0, 0)),
                  pl.BlockSpec((1, Ddp), lambda i: (0, 0))],
        out_specs=(pl.BlockSpec((row_tile, Dop), lambda i: (i, 0)),
                   pl.BlockSpec((8, Dop), lambda i: (i, 0)),
                   pl.BlockSpec((8, Dop), lambda i: (i, 0))),
        compiler_params=pltpu.CompilerParams(
            dimension_semantics=("parallel",), vmem_limit_bytes=VMEM_LIMIT),
    )(xp, wd_b, wu_b, params["mask_down"])

    # --- tiny (1, D) statistics epilogue in plain JAX (e3nn BatchNorm, training-mode batch stats,
    #     reduce='mean', normalization='component').  Exact over the true N nodes.
    n = jnp.float32(N)
    sum_y = p_sy.reshape(num_tiles, 8, Dop)[:, 0, :].sum(axis=0, keepdims=True)
    sum_y2 = p_sy2.reshape(num_tiles, 8, Dop)[:, 0, :].sum(axis=0, keepdims=True)
    mean = sum_y / n
    var = jnp.maximum(sum_y2 / n - mean * mean, 0.0)
    inv_std = jax.lax.rsqrt(var + BN_EPS)
    ch_norm = (sum_y2 / n) @ params["poolm"]                 # pooling is linear -> do it on sums
    col_factor = jax.lax.rsqrt(ch_norm + BN_EPS) @ params["expand"]
    mask = params["mask_out"]
    scale = (mask * inv_std + (1.0 - mask) * col_factor) * params["gamma"]
    shift = params["beta"] - mask * mean * scale

    out = pl.pallas_call(
        _adapter_pass2_kernel,
        out_shape=jax.ShapeDtypeStruct((n_pad, Dop), jnp.float32),
        grid=(num_tiles,),
        in_specs=[pl.BlockSpec((row_tile, Dop), lambda i: (i, 0)),
                  pl.BlockSpec((1, Dop), lambda i: (0, 0)),
                  pl.BlockSpec((1, Dop), lambda i: (0, 0))],
        out_specs=pl.BlockSpec((row_tile, Dop), lambda i: (i, 0)),
        compiler_params=pltpu.CompilerParams(
            dimension_semantics=("parallel",), vmem_limit_bytes=VMEM_LIMIT),
    )(y, scale, shift)
    return out[:N, :params["d_out"]]


def adapter_ref(params, x):
    """Pure-JAX reference mirroring the kernel math (same bf16 operand quantization)."""
    N, d_in = x.shape
    Dip = params["Wd"].shape[0]
    xp = jnp.pad(x, ((0, 0), (0, Dip - d_in))).astype(jnp.bfloat16)
    h = jnp.dot(xp, params["Wd"].astype(jnp.bfloat16), preferred_element_type=jnp.float32)
    h = jnp.where(params["mask_down"] > 0.0, SILU_NORM * h * jax.nn.sigmoid(h), h)
    y = jnp.dot(h.astype(jnp.bfloat16), params["Wu"].astype(jnp.bfloat16),
                preferred_element_type=jnp.float32)
    n = jnp.float32(N)
    sum_y = jnp.sum(y, axis=0, keepdims=True)
    sum_y2 = jnp.sum(y * y, axis=0, keepdims=True)
    mean = sum_y / n
    var = jnp.maximum(sum_y2 / n - mean * mean, 0.0)
    inv_std = jax.lax.rsqrt(var + BN_EPS)
    ch_norm = (sum_y2 / n) @ params["poolm"]
    col_factor = jax.lax.rsqrt(ch_norm + BN_EPS) @ params["expand"]
    mask = params["mask_out"]
    scale = (mask * inv_std + (1.0 - mask) * col_factor) * params["gamma"]
    shift = params["beta"] - mask * mean * scale
    return (y * scale + shift)[:, :params["d_out"]]


# ----------------------------------------------------------------------------- glue (plain JAX)
def make_adapter_params(key, irreps_in, irreps_out, ratio_adapter_down):
    irreps_down = [(mul // ratio_adapter_down, l, p) for mul, l, p in irreps_in]
    Wd, key = o3_linear_flat(key, irreps_in, irreps_down)
    Wu, key = o3_linear_flat(key, irreps_down, irreps_out)
    mask_out, poolm, expand, gamma, beta = bn_meta(irreps_out)
    d_in, d_down, d_out = irreps_dim(irreps_in), irreps_dim(irreps_down), irreps_dim(irreps_out)
    Dip, Ddp, Dop = round_up(d_in, LANE), round_up(d_down, LANE), round_up(d_out, LANE)
    nvc = poolm.shape[1]
    params = {
        "Wd": jnp.asarray(pad2(Wd, Dip, Ddp)),
        "Wu": jnp.asarray(pad2(Wu, Ddp, Dop)),
        "mask_down": jnp.asarray(pad2(scalar_mask(irreps_down), 1, Ddp)),
        "mask_out": jnp.asarray(pad2(mask_out, 1, Dop)),
        "poolm": jnp.asarray(pad2(poolm, Dop, nvc)),
        "expand": jnp.asarray(pad2(expand, nvc, Dop)),
        "gamma": jnp.asarray(pad2(gamma, 1, Dop)),
        "beta": jnp.asarray(pad2(beta, 1, Dop)),
        "d_in": d_in, "d_out": d_out,
    }
    return params, key


def spherical_harmonics(vectors, max_ell):
    """e3nn o3.SphericalHarmonics(normalize=True, normalization='component') up to l=2."""
    assert max_ell <= 2  # TODO(synk): extend generated polynomials beyond l=2 if needed.
    n = jnp.sqrt(jnp.sum(vectors * vectors, axis=-1, keepdims=True))
    u = vectors / jnp.maximum(n, 1e-9)     # guard against zero-length edges
    x, y, z = u[..., 0], u[..., 1], u[..., 2]
    outs = [jnp.ones_like(x)]
    if max_ell >= 1:
        s3 = math.sqrt(3.0)
        outs += [s3 * x, s3 * y, s3 * z]
    if max_ell >= 2:
        s15, s5 = math.sqrt(15.0), math.sqrt(5.0)
        outs += [s15 * x * z, s15 * x * y,
                 s5 * (y * y - 0.5 * (x * x + z * z)),
                 s15 * y * z, 0.5 * s15 * (z * z - x * x)]
    return jnp.stack(outs, axis=-1)


def radial_embedding(lengths, r_max, num_bessel, p):
    """MACE RadialEmbeddingBlock: Bessel basis * polynomial cutoff envelope."""
    x = lengths  # (E, 1)
    n = jnp.arange(1, num_bessel + 1, dtype=jnp.float32)
    bessel = jnp.sqrt(2.0 / r_max) * jnp.sin(n * jnp.pi * x / r_max) / x
    u = x / r_max
    env = (1.0 - 0.5 * (p + 1.0) * (p + 2.0) * u ** p
           + p * (p + 2.0) * u ** (p + 1) - 0.5 * p * (p + 1.0) * u ** (p + 2))
    env = env * (x < r_max).astype(jnp.float32)
    return bessel * env


def build_adapter_mace_params(key, cfg):
    hidden = parse_irreps(cfg["hidden_irreps"])
    num_0e = sum(mul for mul, l, p in hidden if l == 0 and p == 1)
    node_attr_irreps = [(cfg["num_node_feats"], 0, 1)]
    node_feats_irreps = [(num_0e, 0, 1)]
    W_embed, key = o3_linear_flat(key, node_attr_irreps, node_feats_irreps)
    W_embed_pad = pad2(W_embed, round_up(cfg["num_node_feats"], LANE), round_up(num_0e, LANE))
    params = {"node_embedding_W": jnp.asarray(W_embed_pad), "num_0e": num_0e,
              "adapters_before": [], "adapters_after": [], "s_before": [], "s_after": []}
    for i in range(cfg["num_interactions"]):
        if i == 0:
            irreps_nf, irreps_hid = node_feats_irreps, hidden
        elif i == cfg["num_interactions"] - 1:
            irreps_nf, irreps_hid = hidden, [(num_0e, 0, 1)]
        else:
            irreps_nf, irreps_hid = hidden, hidden
        p_b, key = make_adapter_params(key, irreps_nf, irreps_hid, cfg["ratio_adapter_down"])
        p_a, key = make_adapter_params(key, irreps_hid, irreps_hid, cfg["ratio_adapter_down"])
        params["adapters_before"].append(p_b)
        params["adapters_after"].append(p_a)
        params["s_before"].append(jnp.float32(cfg["initial_s"]))
        params["s_after"].append(jnp.float32(cfg["initial_s"]))
    # Fold node_embedding into the layer-0 adapter_before down-projection (both are linear):
    # adapter(node_embedding(x)) == adapter'(x) with Wd' = W_embed @ Wd.  Done in exact f32.
    p0 = dict(params["adapters_before"][0])
    p0["Wd"] = jnp.asarray(np.asarray(params["node_embedding_W"], np.float32)
                           @ np.asarray(p0["Wd"], np.float32))
    p0["d_in"] = cfg["num_node_feats"]
    params["adapter0_fused"] = p0
    return params, key


def adapter_mace_forward(params, data, cfg):
    # compute_lengths_and_vectors (no periodic cell in this demo; sign: sender -> receiver).
    pos, ei = data["coordinates"], data["edge_index"]
    vectors = pos[ei[1]] - pos[ei[0]]
    lengths = jnp.sqrt(jnp.sum(vectors * vectors, axis=-1, keepdims=True))

    node_feats = pallas_linear(data["node_attrs"], params["node_embedding_W"], params["num_0e"])
    edge_attrs = spherical_harmonics(vectors, cfg["max_ell"])
    edge_feats = radial_embedding(lengths, cfg["cut_off"], cfg["num_bessel"],
                                  float(cfg["num_polynomial_cutoff"]))
    if "edge_attrs" in data:
        edge_feats = jnp.concatenate([edge_feats, data["edge_attrs"]], axis=-1)

    out = dict(data)
    out["node_feats_embedding"] = node_feats
    out["edge_attrs_sh"] = edge_attrs
    out["edge_feats"] = edge_feats
    # Layer-0 adapter_before: node_embedding folded into the adapter (single precomposed matmul).
    out["adapter_before_0"] = adapter_apply(params["adapter0_fused"], data["node_attrs"])
    # TODO(synk): InteractionBlock / MessageBlock / NodeUpdateBlock (and hence the per-layer
    # `bn(node_feats) + s_before*ada_before + s_after*ada_after` residual producing
    # node_feats_{idx}) are not reproduced: their class definitions were not provided.
    return out


# ----------------------------------------------------------------------------- demo / test
if __name__ == "__main__":
    cfg = dict(cut_off=5.0, num_bessel=8, num_polynomial_cutoff=5, max_ell=2,
               num_interactions=2, ratio_adapter_down=2, initial_s=0.1,
               num_node_feats=10, num_edge_feats=0, hidden_irreps="8x0e+8x1o",
               avg_num_neighbours=8.0, correlation=3)

    key = jax.random.PRNGKey(0)
    params, key = build_adapter_mace_params(key, cfg)

    n_nodes = 32
    key, k_pos, k_sp, k_hid = jax.random.split(key, 4)
    coordinates = jax.random.normal(k_pos, (n_nodes, 3), jnp.float32) * 2.0
    species = jax.random.randint(k_sp, (n_nodes,), 0, cfg["num_node_feats"])
    node_attrs = jax.nn.one_hot(species, cfg["num_node_feats"], dtype=jnp.float32)
    senders = jnp.concatenate([jnp.arange(n_nodes), jnp.arange(n_nodes)])
    receivers = jnp.concatenate([(jnp.arange(n_nodes) + 1) % n_nodes,
                                 (jnp.arange(n_nodes) + 2) % n_nodes])
    edge_index = jnp.stack([senders, receivers]).astype(jnp.int32)   # (2, 64)

    data = {"coordinates": coordinates, "node_attrs": node_attrs, "edge_index": edge_index}
    out = adapter_mace_forward(params, data, cfg)
    jax.block_until_ready(out["adapter_before_0"])

    RTOL, ATOL = 5e-3, 5e-3  # bf16 matmul operands in both kernel and reference paths

    # node_embedding check (lane-padded bf16 matmul kernel vs plain bf16 dot).
    emb_ref = jnp.dot(
        node_attrs.astype(jnp.bfloat16),
        params["node_embedding_W"][:cfg["num_node_feats"], :params["num_0e"]].astype(jnp.bfloat16),
        preferred_element_type=jnp.float32)
    np.testing.assert_allclose(np.asarray(out["node_feats_embedding"]), np.asarray(emb_ref),
                               rtol=RTOL, atol=ATOL)

    # Adapter kernel vs reference on all three irreps cases:
    #  (a) scalars -> hidden (layer-0 adapter_before), (b) hidden -> hidden (adapter_after),
    #  (c) hidden -> scalars (last-layer adapter_before, exercises scalar-only BatchNorm).
    y_a = adapter_apply(params["adapters_before"][0], out["node_feats_embedding"])
    r_a = adapter_ref(params["adapters_before"][0], out["node_feats_embedding"])

    hidden_dim = irreps_dim(parse_irreps(cfg["hidden_irreps"]))
    hidden_feats = jax.random.normal(k_hid, (n_nodes, hidden_dim), jnp.float32)
    y_b = adapter_apply(params["adapters_after"][0], hidden_feats)
    r_b = adapter_ref(params["adapters_after"][0], hidden_feats)
    y_c = adapter_apply(params["adapters_before"][1], hidden_feats)
    r_c = adapter_ref(params["adapters_before"][1], hidden_feats)

    jax.block_until_ready((y_a, y_b, y_c))
    np.testing.assert_allclose(np.asarray(y_a), np.asarray(r_a), rtol=RTOL, atol=ATOL)
    np.testing.assert_allclose(np.asarray(y_b), np.asarray(r_b), rtol=RTOL, atol=ATOL)
    np.testing.assert_allclose(np.asarray(y_c), np.asarray(r_c), rtol=RTOL, atol=ATOL)

    # Fused (embedding-folded) layer-0 adapter agrees with the unfused path (up to bf16 quant).
    np.testing.assert_allclose(np.asarray(out["adapter_before_0"]), np.asarray(y_a),
                               rtol=5e-2, atol=5e-2)

    assert out["adapter_before_0"].shape == (n_nodes, hidden_dim)
    assert out["node_feats_embedding"].shape == (n_nodes, params["num_0e"])
    assert out["edge_attrs_sh"].shape == (64, (cfg["max_ell"] + 1) ** 2)
    assert out["edge_feats"].shape == (64, cfg["num_bessel"] + cfg["num_edge_feats"])

    print("KERNEL_OK")
</pallas_src>

<mosaic_0001>
module attributes {stable_mosaic.version = 11 : i64} {
  func.func @_matmul_kernel(%arg0: i32, %arg1: memref<32x128xbf16, #tpu.memory_space<vmem>>, %arg2: memref<128x128xbf16, #tpu.memory_space<vmem>>, %arg3: memref<32x128xf32, #tpu.memory_space<vmem>>) attributes {dimension_semantics = [#tpu.dimension_semantics<parallel>], iteration_bounds = array<i64: 1>, scalar_prefetch = 0 : i64, scratch_operands = 0 : i64, tpu.core_type = #tpu.core_type<tc>, window_params = [{transform_indices = @transform_0, window_bounds = array<i64: 32, 128>}, {pipeline_mode = #tpu.pipeline_mode<synchronous>, transform_indices = @transform_1, window_bounds = array<i64: 128, 128>}, {transform_indices = @transform_2, window_bounds = array<i64: 32, 128>}]} {
    %c0 = arith.constant 0 : index
    %c0_0 = arith.constant 0 : index
    %0 = vector.load %arg1[%c0, %c0_0] : memref<32x128xbf16, #tpu.memory_space<vmem>>, vector<32x128xbf16>
    %c0_1 = arith.constant 0 : index
    %c0_2 = arith.constant 0 : index
    %1 = vector.load %arg2[%c0_1, %c0_2] : memref<128x128xbf16, #tpu.memory_space<vmem>>, vector<128x128xbf16>
    %cst = arith.constant dense<0.000000e+00> : vector<32x128xf32>
    %2 = tpu.matmul %0, %1, %cst {dimension_numbers = #tpu.dot_dimension_numbers<[1], [0], [0], [1], [0, 0, 1, 1], [], []>} : vector<32x128xbf16>, vector<128x128xbf16>, vector<32x128xf32> -> vector<32x128xf32>
    %c0_3 = arith.constant 0 : index
    %c0_4 = arith.constant 0 : index
    %3 = vector.load %arg3[%c0_3, %c0_4] : memref<32x128xf32, #tpu.memory_space<vmem>>, vector<32x128xf32>
    tpu.vector_store %arg3[%c0_3, %c0_4], %2 {strides = array<i32>} : memref<32x128xf32, #tpu.memory_space<vmem>>, vector<32x128xf32>,
    return
  }
  func.func @transform_0(%arg0: i32) -> (i32, i32) {
    %c0_i32 = arith.constant 0 : i32
    %c0_i32_0 = arith.constant 0 : i32
    return %arg0, %c0_i32 : i32, i32
  }
  func.func @transform_1(%arg0: i32) -> (i32, i32) {
    %c0_i32 = arith.constant 0 : i32
    %c0_i32_0 = arith.constant 0 : i32
    %c0_i32_1 = arith.constant 0 : i32
    return %c0_i32, %c0_i32_0 : i32, i32
  }
  func.func @transform_2(%arg0: i32) -> (i32, i32) {
    %c0_i32 = arith.constant 0 : i32
    %c0_i32_0 = arith.constant 0 : i32
    return %arg0, %c0_i32 : i32, i32
  }
}

</mosaic_0001>

<bundles_post_ra>
// kernel: tpu_custom_call.1
= control target key start
LH: loop header
LB: loop body
LE: loop exit
PB: predicated region body
PF: predicated region fallthrough
CT: control target
= control target key end

     0   :  { %7 = vsyncpa [#allocation3], 0  ;;  %s346_s0 = inlined_call_operand.hbm [shape: bf16[32,128], index: 0, kind: input, shape index: {}]   ;;  %s347_s1 = inlined_call_operand.hbm [shape: bf16[128,128], index: 1, kind: input, shape index: {}]   ;;  %s348_s2 = inlined_call_operand.hbm [shape: f32[32,128], index: 2, kind: output, shape index: {}]  }
   0x1   :  { %8 = vsyncpa [#allocation6], 0 }
   0x2   :  { %9 = vsyncpa [#allocation4], 0  ;;  %s315_s9 = smov [#allocation2]  }
   0x3   :  { %s15_s10 = sshll.u32 %s315_s9, 4  ;;  %s16_s10 = int_to_ptr.vmem [resolvable:$true] %s15_s10 }
   0x4   :  { %s257_s11 = scalar_lea.vmem %s16_s10, 256  ;;  %p262_p1 = scmp.lt.s32.totalorder %s16_s10, %s16_s10 }
   0x5   :  { %p258_p0 = scmp.ne.s32.totalorder %s16_s10, %s257_s11  ;;  %p263_p2 = scmp.lt.s32.totalorder %s257_s11, %s257_s11 }
   0x7   :  { %p264_p3 = por %p263_p2, %p262_p1 }
   0x9   :  { %p265_p4 = pnand %p264_p3, %p258_p0 }
   0xb   :  { %268 = shalt.err (!%p265_p4)
}
   0xc   :  { %s316_s12 = smov 64   ;;  %s317_s13 = smov 4  }
   0xd   :  { %21 = dma.hbm_to_vmem [thread:$0]  %s346_s0, 256, %s16_s10, [#allocation3], %s316_s12, %s316_s12, %s317_s13  }
   0xe   :  { %s318_s16 = smov [#allocation5]  }
   0xf   :  { %s27_s17 = sshll.u32 %s318_s16, 4  ;;  %s28_s17 = int_to_ptr.vmem [resolvable:$true] %s27_s17 }
  0x10   :  { %s277_s18 = scalar_lea.vmem %s28_s17, 1024  ;;  %p282_p6 = scmp.lt.s32.totalorder %s28_s17, %s28_s17 }
  0x11   :  { %p278_p5 = scmp.ne.s32.totalorder %s28_s17, %s277_s18  ;;  %p283_p7 = scmp.lt.s32.totalorder %s277_s18, %s277_s18 }
  0x13   :  { %p284_p8 = por %p283_p7, %p282_p6 }
  0x15   :  { %p285_p9 = pnand %p284_p8, %p278_p5 }
  0x17   :  { %288 = shalt.err (!%p285_p9)
}
  0x18   :  { %33 = dma.hbm_to_vmem [thread:$0]  %s347_s1, 1024, %s28_s17, [#allocation6], %s316_s12, %s316_s12, %s317_s13  }
  0x19   :  { %309 = dma.done.wait [#allocation3], 256  }
  0x1a   :  { %310 = vsyncadd [#allocation3], 4294967040 }
  0x1b   :  { %311 = dma.done.wait [#allocation6], 1024  }
  0x1c   :  { %312 = vsyncadd [#allocation6], 4294966272  ;;  %v239_v0 = vld [vmem:[#allocation5 + $0x38] sm:$0xff]   ;;  %v240_v1 = vld [vmem:[#allocation5 + $0x30] sm:$0xff]   ;;  %s319_s0 = smov [#allocation7]  }
  0x1d   :  { %212 = vmatprep.subr.bf16.mxu0 %v239_v0  ;;  %v241_v2 = vld [vmem:[#allocation5 + $0x28] sm:$0xff]   ;;  %v242_v3 = vld [vmem:[#allocation5 + $0x20] sm:$0xff]   ;;  %v247_v4 = vld [vmem:[#allocation2] sm:$0xff]   ;;  %s179_s1 = sshll.u32 %s319_s0, 4  ;;  %s180_s1 = int_to_ptr.vmem [resolvable:$true] %s179_s1 }
  0x1e   :  { %213 = vmatpush3.bf16.msra.mxu0 %v239_v0  ;;  %228 = vmatprep.mubr.bf16.mxu0 %v247_v4  ;;  %v243_v5 = vld [vmem:[#allocation5 + $0x18] sm:$0xff]   ;;  %v244_v6 = vld [vmem:[#allocation5 + $0x10] sm:$0xff]   ;;  %v245_v7 = vld [vmem:[#allocation5 + $0x8] sm:$0xff]   ;;  %s289_s21 = scalar_lea.vmem %s180_s1, 512  ;;  %p294_p11 = scmp.lt.s32.totalorder %s180_s1, %s180_s1 }
  0x1f   :  { %214 = vmatprep.subr.bf16.mxu0 %v240_v1  ;;  %v246_v8 = vld [vmem:[#allocation5] sm:$0xff]   ;;  %v248_v9 = vld [vmem:[#allocation2 + $0x8] sm:$0xff]   ;;  %p290_p10 = scmp.ne.s32.totalorder %s180_s1, %s289_s21  ;;  %p295_p12 = scmp.lt.s32.totalorder %s289_s21, %s289_s21 }
  0x21   :  { %p296_p13 = por %p295_p12, %p294_p11 }
  0x22   :  { %215 = vmatpush3.bf16.msra.mxu0 %v240_v1 }
  0x23   :  { %216 = vmatprep.subr.bf16.mxu0 %v241_v2  ;;  %p297_p0 = pnand %p296_p13, %p290_p10 }
  0x26   :  { %217 = vmatpush3.bf16.msra.mxu0 %v241_v2 }
  0x27   :  { %218 = vmatprep.subr.bf16.mxu0 %v242_v3 }
  0x2a   :  { %219 = vmatpush3.bf16.msra.mxu0 %v242_v3 }
  0x2b   :  { %220 = vmatprep.subr.bf16.mxu0 %v243_v5 }
  0x2e   :  { %221 = vmatpush3.bf16.msra.mxu0 %v243_v5 }
  0x2f   :  { %222 = vmatprep.subr.bf16.mxu0 %v244_v6 }
  0x32   :  { %223 = vmatpush3.bf16.msra.mxu0 %v244_v6 }
  0x33   :  { %224 = vmatprep.subr.bf16.mxu0 %v245_v7 }
  0x36   :  { %225 = vmatpush3.bf16.msra.mxu0 %v245_v7 }
  0x37   :  { %226 = vmatprep.subr.bf16.mxu0 %v246_v8 }
  0x3a   :  { %227 = vmatpush3.bf16.msra.mxu0 %v246_v8 }
  0x3d   :  { %229 = vmatmul.mubr.bf16.vlgmr.msra.gmra.mxu0 %v248_v9 }
  0xfd   :  { %v230_v10 = vpop.f32.mrf.mxu0 }
  0xfe   :  { %172 = vst [vmem:[#allocation7 + $0x10] sm:$0xff] %v230_v10 }
  0xff   :  { %v155_v11 = vpop.f32.mrf.mxu0 }
 0x100   :  { %170 = vst [vmem:[#allocation7] sm:$0xff] %v155_v11 }
 0x101   :  { %v231_v12 = vpop.f32.mrf.mxu0 }
 0x102   :  { %173 = vst [vmem:[#allocation7 + $0x18] sm:$0xff] %v231_v12 }
 0x103   :  { %v158_v13 = vpop.f32.mrf.mxu0 }
 0x104   :  { %171 = vst [vmem:[#allocation7 + $0x8] sm:$0xff] %v158_v13 }
 0x105   :  { %300 = shalt.err (!%p297_p0)
}
 0x106   :  { %s320_s22 = smov 128   ;;  %s321_s23 = smov 8  }
 0x107   :  { %185 = dma.vmem_to_hbm [thread:$0]  %s180_s1, 512, %s348_s2, [#allocation4], %s320_s22, %s320_s22, %s321_s23  }
 0x108   :  { %313 = dma.done.wait [#allocation4], 512  }
 0x109   :  { %314 = vsyncadd [#allocation4], 4294966784 }
 0x10a   :  { %189 = vsyncpa [#allocation3], 1 }
 0x10b   :  { %190 = vsyncpa [#allocation6], 1 }
 0x10c   :  { %191 = vsyncpa [#allocation4], 1 }

</bundles_post_ra>
